<compile_context>
chip_gen: v7x
topology: tpu7x:2x2x1
jax: 0.10.0
libtpu: 0.0.40
codegen_flags: <defaults>
</compile_context>

<pallas_src>
import functools

import jax
import jax.numpy as jnp
from jax.experimental import pallas as pl
from jax.experimental.pallas import tpu as pltpu

LANES = 128
SUBLANES = 8


def _lgrelu_kernel(params_ref, x_ref, o_ref, *, has_maxv: bool):
    # params_ref: SMEM f32[4] = [threshold, leak, sub, maxv] (scalar prefetch).
    x = x_ref[...]
    cdt = x.dtype
    thr = params_ref[0].astype(cdt)
    leak = params_ref[1].astype(cdt)
    sub = params_ref[2].astype(cdt)
    y = jnp.maximum(x, thr) + jnp.minimum(x, thr) * leak - sub
    if has_maxv:
        y = jnp.minimum(y, params_ref[3].astype(cdt))
    o_ref[...] = y.astype(o_ref.dtype)


def learn_general_relu(x, threshold, leak, sub, maxv=None, *,
                       block_bytes=2 * 1024 * 1024, donate_input=False):
    """Apply LearnGeneralReLU elementwise. x: any shape, any float dtype.

    block_bytes: target bytes per streamed block (per buffer). 2 MiB keeps
    2*in + 2*out double-buffered buffers at 8 MiB -> fits every generation's
    scoped VMEM while staying in the >=85%-of-HBM-roofline regime.
    donate_input: alias the (lane-aligned) input buffer to the output to cut
    peak HBM footprint when the caller no longer needs x.
    """
    orig_shape = x.shape
    dtype = x.dtype
    has_maxv = maxv is not None

    n = x.size
    if n == 0:
        return x

    itemsize = jnp.dtype(dtype).itemsize
    # Sublane packing of the dtype: 8 rows (f32), 16 (bf16/f16), 32 (8-bit).
    packing = max(SUBLANES, 32 // max(1, itemsize))

    # Lane-align the flat slab.  n % 128 == 0 (the common activation case) is
    # a zero-copy reshape; otherwise we pad (<128 elems) and slice on the way
    # out.  A fully pad-free ragged path would need 1-D ragged blocking; the
    # pad+slice cost only applies to lane-misaligned element counts.
    n_lane = pl.cdiv(n, LANES) * LANES
    needs_pad = n_lane != n
    xf = x.reshape(-1)
    if needs_pad:
        xf = jnp.pad(xf, (0, n_lane - n))
    rows = n_lane // LANES
    x2d = xf.reshape(rows, LANES)

    # --- tile selection -----------------------------------------------------
    rt = max(packing, int(block_bytes) // (LANES * itemsize))  # rows / block
    rt = min(rt, rows)
    rt = max(packing, (rt // packing) * packing)               # dtype packing
    # Guarantee >= 2 blocks whenever possible so ("parallel",) can split the
    # grid across v7x's two TensorCores (ragged last block is fine).
    if rows > packing:
        half = max(packing, (((rows + 1) // 2) // packing) * packing)
        rt = min(rt, half)
    grid = (pl.cdiv(rows, rt),)

    block_bytes_actual = rt * LANES * itemsize
    vmem_limit = int(min(48 * 1024 * 1024,
                         max(32 * 1024 * 1024, 6 * block_bytes_actual)))

    params = jnp.array(
        [threshold, leak, sub, maxv if has_maxv else 0.0], dtype=jnp.float32
    )

    out = pl.pallas_call(
        functools.partial(_lgrelu_kernel, has_maxv=has_maxv),
        out_shape=jax.ShapeDtypeStruct((rows, LANES), dtype),
        grid_spec=pltpu.PrefetchScalarGridSpec(
            num_scalar_prefetch=1,          # params land in SMEM once
            grid=grid,
            in_specs=[
                pl.BlockSpec((rt, LANES), lambda i, params: (i, 0)),
            ],
            out_specs=pl.BlockSpec((rt, LANES), lambda i, params: (i, 0)),
        ),
        compiler_params=pltpu.CompilerParams(
            dimension_semantics=("parallel",),
            vmem_limit_bytes=vmem_limit,
        ),
        input_output_aliases=(
            {1: 0} if (donate_input and not needs_pad) else {}
        ),
    )(params, x2d)

    if needs_pad:
        return out.reshape(-1)[:n].reshape(orig_shape)
    # Lane-aligned fast path: contiguous reshape only, no pad / slice copies.
    return out.reshape(orig_shape)


def reference(x, threshold, leak, sub, maxv=None):
    y = jnp.maximum(x, threshold) + jnp.minimum(x, threshold) * leak - sub
    if maxv is not None:
        y = jnp.minimum(y, maxv)
    return y


if __name__ == "__main__":
    # Deterministic parameter init matching the module defaults.
    threshold = 0.0
    leak_init = 0.1
    sub_init = 0.1
    maxv_init = 10.0

    key = jax.random.PRNGKey(0)

    # NCHW conv-style activation tensor (lane-aligned fast path, 2-block grid).
    x = jax.random.normal(key, (2, 4, 16, 16), dtype=jnp.float32) * 5.0
    y = jax.block_until_ready(
        learn_general_relu(x, threshold, leak_init, sub_init, maxv_init)
    )
    y_ref = reference(x, threshold, leak_init, sub_init, maxv_init)
    assert y.shape == x.shape and y.dtype == x.dtype
    assert jnp.allclose(y, y_ref, atol=1e-6, rtol=1e-6), "f32 mismatch vs reference"

    # Unaligned shape (exercises the pad / slice path).
    x_u = jax.random.normal(jax.random.PRNGKey(1), (3, 5, 7, 11), dtype=jnp.float32) * 5.0
    y_u = jax.block_until_ready(
        learn_general_relu(x_u, threshold, leak_init, sub_init, maxv_init)
    )
    y_u_ref = reference(x_u, threshold, leak_init, sub_init, maxv_init)
    assert y_u.shape == x_u.shape and y_u.dtype == x_u.dtype
    assert jnp.allclose(y_u, y_u_ref, atol=1e-6, rtol=1e-6), "pad-path mismatch"

    # bf16 I/O preserved end-to-end; compute natively in bf16.
    x_bf = x.astype(jnp.bfloat16)
    y_bf = jax.block_until_ready(
        learn_general_relu(x_bf, threshold, leak_init, sub_init, maxv_init)
    )
    y_bf_ref = reference(
        x_bf.astype(jnp.float32), threshold, leak_init, sub_init, maxv_init
    ).astype(jnp.bfloat16)
    assert y_bf.dtype == jnp.bfloat16 and y_bf.shape == x_bf.shape
    assert jnp.allclose(
        y_bf.astype(jnp.float32), y_bf_ref.astype(jnp.float32), atol=2e-2, rtol=2e-2
    ), "bf16 mismatch vs reference"

    # No maxv (module constructed with maxv_init=None).
    y_nomax = jax.block_until_ready(
        learn_general_relu(x, threshold, leak_init, sub_init, None)
    )
    assert jnp.allclose(
        y_nomax, reference(x, threshold, leak_init, sub_init, None), atol=1e-6, rtol=1e-6
    ), "no-maxv mismatch"

    print("KERNEL_OK")
</pallas_src>

<mosaic_0001>
module attributes {stable_mosaic.version = 11 : i64} {
  func.func @_lgrelu_kernel(%arg0: i32, %arg1: memref<4xf32, #tpu.memory_space<smem>>, %arg2: memref<8x128xf32, #tpu.memory_space<vmem>>, %arg3: memref<8x128xf32, #tpu.memory_space<vmem>>) attributes {dimension_semantics = [#tpu.dimension_semantics<parallel>], iteration_bounds = array<i64: 2>, scalar_prefetch = 1 : i64, scratch_operands = 0 : i64, tpu.core_type = #tpu.core_type<tc>, window_params = [{transform_indices = @transform_0, window_bounds = array<i64: 8, 128>}, {transform_indices = @transform_1, window_bounds = array<i64: 8, 128>}]} {
    %c0 = arith.constant 0 : index
    %c0_0 = arith.constant 0 : index
    %0 = vector.load %arg2[%c0, %c0_0] : memref<8x128xf32, #tpu.memory_space<vmem>>, vector<8x128xf32>
    %c0_1 = arith.constant 0 : index
    %1 = memref.load %arg1[%c0_1] : memref<4xf32, #tpu.memory_space<smem>>
    %c1 = arith.constant 1 : index
    %2 = memref.load %arg1[%c1] : memref<4xf32, #tpu.memory_space<smem>>
    %c2 = arith.constant 2 : index
    %3 = memref.load %arg1[%c2] : memref<4xf32, #tpu.memory_space<smem>>
    %4 = vector.broadcast %1 : f32 to vector<8x128xf32>
    %5 = arith.maximumf %0, %4 : vector<8x128xf32>
    %6 = vector.broadcast %1 : f32 to vector<8x128xf32>
    %7 = arith.minimumf %0, %6 : vector<8x128xf32>
    %8 = vector.broadcast %2 : f32 to vector<8x128xf32>
    %9 = arith.mulf %7, %8 : vector<8x128xf32>
    %10 = arith.addf %5, %9 : vector<8x128xf32>
    %11 = vector.broadcast %3 : f32 to vector<8x128xf32>
    %12 = arith.subf %10, %11 : vector<8x128xf32>
    %c3 = arith.constant 3 : index
    %13 = memref.load %arg1[%c3] : memref<4xf32, #tpu.memory_space<smem>>
    %14 = vector.broadcast %13 : f32 to vector<8x128xf32>
    %15 = arith.minimumf %12, %14 : vector<8x128xf32>
    %c0_2 = arith.constant 0 : index
    %c0_3 = arith.constant 0 : index
    %16 = vector.load %arg3[%c0_2, %c0_3] : memref<8x128xf32, #tpu.memory_space<vmem>>, vector<8x128xf32>
    tpu.vector_store %arg3[%c0_2, %c0_3], %15 {strides = array<i32>} : memref<8x128xf32, #tpu.memory_space<vmem>>, vector<8x128xf32>,
    return
  }
  func.func @transform_0(%arg0: i32, %arg1: memref<4xf32, #tpu.memory_space<smem>>) -> (i32, i32) {
    %c0_i32 = arith.constant 0 : i32
    %c0_i32_0 = arith.constant 0 : i32
    return %arg0, %c0_i32 : i32, i32
  }
  func.func @transform_1(%arg0: i32, %arg1: memref<4xf32, #tpu.memory_space<smem>>) -> (i32, i32) {
    %c0_i32 = arith.constant 0 : i32
    %c0_i32_0 = arith.constant 0 : i32
    return %arg0, %c0_i32 : i32, i32
  }
}

</mosaic_0001>

<bundles_post_ra>
// kernel: tpu_custom_call.1
= control target key start
LH: loop header
LB: loop body
LE: loop exit
PB: predicated region body
PF: predicated region fallthrough
CT: control target
= control target key end

     0   :  { %s600_s0 = inlined_call_operand.hbm [shape: f32[4], index: 0, kind: input, shape index: {}]   ;;  %s601_s1 = inlined_call_operand.hbm [shape: f32[16,128], index: 1, kind: input, shape index: {}]   ;;  %s602_s2 = inlined_call_operand.hbm [shape: f32[16,128], index: 2, kind: output, shape index: {}]  }
   0x1   :  { %s299_s11 = scalar_lea.hbm %s600_s0, 16 }
   0x2   :  { %p300_p0 = scmp.ne.s32.totalorder %s600_s0, %s299_s11  ;;  %p303_p1 = scmp.lt.u32.totalorder %s299_s11, %s600_s0 }
   0x4   :  { %p305_p2 = pnand %p303_p1, %p300_p0 }
   0x6   :  { %308 = shalt.err (!%p305_p2)  }
   0x7   :  { %s409_s16 = smov [#allocation3]  }
   0x8   :  { %8 = dma.hbm_to_smem %s600_s0, 16, %s409_s16, [#allocation2] }
   0x9   :  { %383 = dma.done.wait [#allocation2], 16 }
   0xa   :  { %384 = vsyncadd [#allocation2], 4294967280 }
   0xb   :  { %10 = sfence }
   0xc   :  { %11 = vsyncpa [#allocation5], 0 }
   0xd   :  { %13 = vsyncpa [#allocation5 + $0x1], 0 }
   0xe   :  { %14 = vsyncpa [#allocation6], 0 }
   0xf   :  { %16 = vsyncpa [#allocation6 + $0x1], 0  ;;  %s439_s19 = smov 0   ;;  %s441_s20 = smov 0  }
  0x10   :  { %s443_s21 = smov 0   ;;  %s445_s22 = smov 0  }
  0x11 LB: > { %s460_s0 = sadd.s32 4294967295, %s407_s22   ;;  %s237_s23 = sadd.s32 4294967294, %s407_s22   ;;  %s407_s22 = sphi %s445_s22, %s617_s22   ;;  %s403_s21 = sphi %s443_s21, %s616_s21   ;;  %s399_s20 = sphi %s441_s20, %s615_s20   ;;  %s395_s19 = sphi %s439_s19, %s614_s19  }
  0x12   : > { %s464_s24 = sadd.s32 1, %s407_s22   ;;  %s29_s25 = sadd.s32 1, %s403_s21 }
  0x13   : > { %s26_s26 = ssub.s32 %s407_s22, %s464_s24  ;;  %p36_p3 = scmp.ne.s32.totalorder %s403_s21, %s399_s20 }
  0x14   : > { %p27_p4 = scmp.eq.s32.totalorder %s26_s26, 0  ;;  %p37_p5 = scmp.eq.s32.totalorder %s407_s22, 0 }
  0x15   : > { %p42_p6 = scmp.ne.s32.totalorder %s399_s20, %s395_s19  ;;  %p43_p7 = scmp.eq.s32.totalorder %s460_s0, 0 }
  0x16   : > { %s476_s27 = scalar_select %p27_p4, %s403_s21, %s29_s25  }
  0x17   : > { %p478_p8 = por %p37_p5, %p36_p3  ;;  %p482_p9 = por %p43_p7, %p42_p6 }
  0x18   : > { %p66_p10 = scmp.eq.s32.totalorder %s460_s0, 1  ;;  %p72_p11 = scmp.eq.s32.totalorder %s237_s23, 1 }
  0x19   : > { %p264_p13 = scmp.lt.s32.totalorder %s407_s22, 2  ;;  %s92_s4 = sand.u32 1, %s403_s21  }
  0x1a   : > { %p489_p0 = por %p66_p10, %p36_p3  ;;  %p493_p1 = por %p72_p11, %p42_p6 }
  0x1b   : > { %s241_s5 = sshll.u32 %s407_s22, 7  ;;  %s240_s6 = sshll.u32 %s92_s4, 3 }
  0x1c   : > { %s606_s30 = scalar_select %p489_p0, 1, 0 }
  0x1d   : > { %s607_s3 = scalar_select %p493_p1, 1, 0 }
  0x1e   : > { %s502_s9 = scalar_lea.hbm %s601_s1, %s241_s5  ;;  %s96_s10 = scalar_lea.vmem [#allocation4], %s240_s6 }
  0x1f   : > { %s103_s11 = sshll.u32 %s96_s10, 4  ;;  %p506_p2 = pnand %p264_p13, %p478_p8  ;;  %s510_s11 = int_to_ptr.vmem [resolvable:$true] %s103_s11 }
  0x20   : > { %s93_s13 = scalar_lea.sflag [#allocation5], %s92_s4  ;;  %s309_s14 = scalar_lea.hbm %s502_s9, 128 }
  0x21   : > { %p310_p5 = scmp.ne.s32.totalorder %s502_s9, %s309_s14  ;;  %p311_p6 = pneg %p506_p2 }
  0x22   : > { %s314_s17 = scalar_lea.hbm %s601_s1, 256  ;;  %p315_p8 = scmp.lt.u32.totalorder %s502_s9, %s601_s1 }
  0x23   : > { %p312_p7 = pnand %p311_p6, %p310_p5  ;;  %p316_p11 = scmp.lt.u32.totalorder %s314_s17, %s309_s14 }
  0x24   : > { %p318_p12 = scmp.lt.u32.totalorder %s309_s14, %s502_s9 }
  0x25   : > { %p313_p10 = pneg %p312_p7  ;;  %p317_p13 = por %p316_p11, %p315_p8 }
  0x27   : > { %p319_p3 = por %p318_p12, %p317_p13 }
  0x29   : > { %p320_p4 = pnand %p319_p3, %p313_p10 }
  0x2b   : > { %323 = shalt.err (!%p320_p4)
}
  0x2c   : > { %s324_s25 = scalar_lea.vmem %s510_s11, 128  ;;  %s410_s26 = smov [#allocation4]  }
  0x2d   : > { %p325_p5 = scmp.ne.s32.totalorder %s510_s11, %s324_s25  ;;  %s329_s28 = sshll.u32 %s410_s26, 4  ;;  %s330_s28 = int_to_ptr.vmem [resolvable:$false] %s329_s28 }
  0x2e   : > { %s331_s4 = scalar_lea.vmem %s330_s28, 256  ;;  %p332_p0 = scmp.lt.s32.totalorder %s510_s11, %s330_s28 }
  0x2f   : > { %p327_p7 = pnand %p325_p5, %p311_p6  ;;  %p333_p8 = scmp.lt.s32.totalorder %s331_s4, %s324_s25 }
  0x31   : > { %p328_p1 = pneg %p327_p7  ;;  %p334_p11 = por %p333_p8, %p332_p0 }
  0x33   : > { %p335_p12 = pnand %p334_p11, %p328_p1 }
  0x35   : > { %338 = shalt.err (!%p335_p12)
}
  0x36   : > { %259 = dma.hbm_to_vmem [thread:$0]  (!%p506_p2), %s502_s9, 128, %s510_s11, %s93_s13  }
  0x37   : > { %p609_p3 = scmp.lt.s32.totalorder %s407_s22, 3  ;;  %p610_p4 = scmp.ge.s32.totalorder %s407_s22, 1 }
  0x39   : > { %p109_p6 = pnand %p610_p4, %p609_p3 }
  0x3a   : > { %s544_s5 = sand.u32 (!%p109_p6), 1, %s399_s20  }
  0x3b   : > { %112 = sbr.rel (%p109_p6) target bundleno = 98 (0x62), region = 24  ;;  %s243_s6 = sshll.u32 (!%p109_p6), %s544_s5, 3 }
  0x3c   : > { %s115_s7 = scalar_lea.sflag (!%p109_p6), [#allocation5], %s544_s5  ;;  %s118_s8 = scalar_lea.vmem (!%p109_p6), [#allocation4], %s243_s6 }
  0x42   : > { %386 = dma.done.wait (%p482_p9), %s115_s7, 128  }
  0x43   : > { %388 = vsyncadd (%p482_p9), %s115_s7, 4294967168  ;;  %s138_s9 = sld [smem:[#allocation3]]  ;;  %s245_s10 = sld [smem:[#allocation3 + $0x1]]  ;;  %v137_v0 = vld [vmem:[%s118_s8] sm:$0xff] }
  0x44   : > { %s246_s11 = sld [smem:[#allocation3 + $0x2]]  ;;  %s247_s12 = sld [smem:[#allocation3 + $0x3]] }
  0x45   : > { %s136_s13 = scalar_lea.vmem [#allocation7], %s243_s6  ;;  %s249_s29 = sshll.u32 %s460_s0, 7 }
  0x46   : > { %s167_s14 = sshll.u32 %s136_s13, 4  ;;  %s558_s17 = scalar_lea.hbm %s602_s2, %s249_s29  ;;  %s553_s14 = int_to_ptr.vmem [resolvable:$true] %s167_s14 }
  0x47   : > { %s154_s18 = scalar_lea.sflag [#allocation6], %s544_s5  ;;  %s339_s23 = scalar_lea.vmem %s553_s14, 128 }
  0x48   : > { %p340_p9 = scmp.ne.s32.totalorder %s553_s14, %s339_s23  ;;  %p611_p0 = scmp.ne.s32.totalorder %s606_s30, 0 }
  0x49   : > { %v141_v1 = vstv %s138_s9  ;;  %v144_v2 = vstv %s245_s10  ;;  %s411_s0 = smov [#allocation7]  }
  0x4a   : > { %v142_v3 = vmax.f32 %v137_v0, %v141_v1  ;;  %v143_v4 = vmin.f32 %v137_v0, %v141_v1  ;;  %v147_v6 = vstv %s246_s11  ;;  %v150_v8 = vstv %s247_s12  ;;  %p341_p1 = pnand %p340_p9, %p611_p0  ;;  %s343_s25 = sshll.u32 %s411_s0, 4  ;;  %s344_s25 = int_to_ptr.vmem [resolvable:$false] %s343_s25 }
  0x4b   : > { %s345_s26 = scalar_lea.vmem %s344_s25, 256  ;;  %p346_p10 = scmp.lt.s32.totalorder %s553_s14, %s344_s25 }
  0x4c   : > { %v145_v5 = vmul.f32 %v144_v2, %v143_v4  ;;  %p342_p2 = pneg %p341_p1  ;;  %p347_p13 = scmp.lt.s32.totalorder %s345_s26, %s339_s23 }
  0x4e   : > { %v146_v7 = vadd.f32 %v145_v5, %v142_v3  ;;  %p348_p5 = por %p347_p13, %p346_p10 }
  0x50   : > { %v148_v9 = vsub.f32 %v146_v7, %v147_v6  ;;  %p349_p7 = pnand %p348_p5, %p342_p2 }
  0x52   : > { %v151_v10 = vmin.f32 %v148_v9, %v150_v8 }
  0x54   : > { %152 = vst [vmem:[%s136_s13] sm:$0xff] %v151_v10 }
  0x55   : > { %352 = shalt.err (!%p349_p7)
}
  0x56   : > { %s353_s28 = scalar_lea.hbm %s558_s17, 128  ;;  %s357_s6 = scalar_lea.hbm %s602_s2, 256 }
  0x57   : > { %p354_p8 = scmp.ne.s32.totalorder %s558_s17, %s353_s28  ;;  %p358_p3 = scmp.lt.u32.totalorder %s558_s17, %s602_s2 }
  0x58   : > { %p359_p4 = scmp.lt.u32.totalorder %s357_s6, %s353_s28  ;;  %p361_p9 = scmp.lt.u32.totalorder %s353_s28, %s558_s17 }
  0x59   : > { %p355_p11 = pnand %p354_p8, %p611_p0 }
  0x5a   : > { %p360_p6 = por %p359_p4, %p358_p3 }
  0x5b   : > { %p356_p12 = pneg %p355_p11 }
  0x5c   : > { %p362_p1 = por %p361_p9, %p360_p6 }
  0x5e   : > { %p363_p2 = pnand %p362_p1, %p356_p12 }
  0x60   : > { %366 = shalt.err (!%p363_p2)
}
  0x61   : > { %254 = dma.vmem_to_hbm [thread:$0]  (%p611_p0), %s553_s14, 128, %s558_s17, %s154_s18  }
  0x62 PF: > { %s179_s9 = sand.u32 1, %s395_s19   ;;  %p612_p10 = scmp.ne.s32.totalorder %s607_s3, 0 }
  0x63   : > { %p613_p13 = scmp.ge.s32.totalorder %s407_s22, 2  ;;  %s180_s10 = scalar_lea.sflag [#allocation6], %s179_s9 }
  0x65   : > { %p261_p5 = pnand %p613_p13, %p612_p10 }
  0x67   : > { %390 = dma.done.wait (!%p261_p5), %s180_s10, 128  }
  0x68   : > { %392 = vsyncadd (!%p261_p5), %s180_s10, 4294967168  ;;  %p19_p7 = scmp.ge.s32.totalorder %s464_s24, 4   ;;  %s614_s19 = smov %s399_s20 }
  0x69   : > { %s615_s20 = smov %s403_s21  ;;  %s616_s21 = smov %s476_s27 }
  0x6a   : > { %s617_s22 = smov %s464_s24  ;;  %21 = sbr.rel (!%p19_p7) target bundleno = 17 (0x11), region = 69 }
  0x71   :  { %185 = vsyncpa [#allocation5], 1 }
  0x72   :  { %187 = vsyncpa [#allocation5 + $0x1], 1 }
  0x73   :  { %188 = vsyncpa [#allocation6], 1 }
  0x74   :  { %190 = vsyncpa [#allocation6 + $0x1], 1 }

</bundles_post_ra>
